<compile_context>
chip_gen: v6e
topology: v6e:2x2x1
jax: 0.10.0
libtpu: 0.0.40
codegen_flags: <defaults>
</compile_context>

<pallas_src>
import jax
import jax.numpy as jnp
from jax.experimental import pallas as pl
from jax.experimental.pallas import tpu as pltpu


def _round_up(x, m):
    return (x + m - 1) // m * m


def _min_pool_kernel(x_ref, m_ref, o_ref):
    # x_ref: (TB, TS, TH) hidden-state tile (native dtype)
    # m_ref: (TB, TS, 1)  attention-mask tile (same dtype; 0.0 where padded)
    # o_ref: (TB, TH)     running-min accumulator (resident across the S axis)
    x = x_ref[...]
    m = m_ref[...]
    fill = jnp.asarray(1e-4, dtype=x.dtype)          # replicate `embeddings[mask==0] = 0.0001`
    masked = jnp.where(m == 0, fill, x)              # (TB, TS, TH)

    # Two-stage reduction over the sequence (sublane) axis: fold halves with
    # elementwise minimums (VPU work, tile-aligned slices) until <= 8 rows
    # remain, then a single small sublane reduce on the XLU.
    r = masked
    n = r.shape[1]
    while n > 8 and n % 16 == 0:
        half = n // 2
        r = jnp.minimum(r[:, :half, :], r[:, half:n, :])
        n = half
    blk_min = jnp.min(r, axis=1)                     # (TB, TH)

    s = pl.program_id(2)

    @pl.when(s == 0)
    def _init():
        o_ref[...] = blk_min.astype(o_ref.dtype)

    @pl.when(s > 0)
    def _accum():
        o_ref[...] = jnp.minimum(o_ref[...], blk_min.astype(o_ref.dtype))


def min_pooling(last_hidden_state, attention_mask, *, tb=8, ts=256, th=512):
    """last_hidden_state: [B, S, H] float (f32/bf16), attention_mask: [B, S] numeric."""
    x = last_hidden_state
    B, S, H = x.shape
    dtype = x.dtype
    mask = attention_mask.astype(dtype).reshape(B, S, 1)

    # ---- tile sizes (respect the (8, 128) block constraint) -----------------
    # Hidden tile: a multiple of 128 that divides H, else the full H dim.
    if H % 128 == 0:
        TH = next(t for t in (th, 384, 256, 128) if t % 128 == 0 and H % t == 0)
    else:
        TH = H
    # Sequence tile: multiple of 8; S padded so the grid divides evenly.
    ts = max(8, _round_up(ts, 8))
    Sp = _round_up(S, 8)
    if Sp <= ts:
        TS = Sp
    else:
        Sp = _round_up(Sp, ts)
        TS = ts
    # Batch tile: 8 rows per step for sublane-dense output stores.
    TB = tb
    Bp = _round_up(B, TB)

    # ---- pad so every grid block is full ------------------------------------
    # Padded sequence positions get mask=1 and value=+max so they NEVER win the
    # min (padding with mask=0 would wrongly inject the 1e-4 fill). Padded batch
    # rows are sliced off at the end.
    pad_b, pad_s = Bp - B, Sp - S
    if pad_b or pad_s:
        big = jnp.asarray(jnp.finfo(dtype).max, dtype)
        x = jnp.pad(x, ((0, pad_b), (0, pad_s), (0, 0)), constant_values=big)
        mask = jnp.pad(mask, ((0, pad_b), (0, pad_s), (0, 0)), constant_values=1)

    grid = (Bp // TB, H // TH, Sp // TS)

    itemsize = jnp.dtype(dtype).itemsize
    cost = pl.CostEstimate(
        flops=Bp * Sp * H,  # one compare/select + one min per element
        transcendentals=0,
        bytes_accessed=Bp * Sp * H * itemsize + Bp * Sp * itemsize + Bp * H * itemsize,
    )

    out = pl.pallas_call(
        _min_pool_kernel,
        out_shape=jax.ShapeDtypeStruct((Bp, H), dtype),
        grid_spec=pltpu.PrefetchScalarGridSpec(
            num_scalar_prefetch=0,
            grid=grid,
            in_specs=[
                pl.BlockSpec((TB, TS, TH), lambda b, h, s: (b, s, h)),
                pl.BlockSpec((TB, TS, 1), lambda b, h, s: (b, s, 0)),
            ],
            out_specs=pl.BlockSpec((TB, TH), lambda b, h, s: (b, h)),
        ),
        compiler_params=pltpu.CompilerParams(
            dimension_semantics=("parallel", "parallel", "arbitrary"),
        ),
        cost_estimate=cost,
    )(x, mask)

    return out[:B]


if __name__ == "__main__":
    key = jax.random.PRNGKey(0)

    # Shape implied by the module's forward: [batch, seq, hidden] + [batch, seq].
    B, S, H = 2, 8, 32
    k_x, _ = jax.random.split(key)
    lengths = jnp.array([6, 4], dtype=jnp.int32)
    attention_mask = (jnp.arange(S)[None, :] < lengths[:, None]).astype(jnp.int32)
    x_f32 = jax.random.normal(k_x, (B, S, H), dtype=jnp.float32)

    # Test both f32 and the bandwidth-friendly bf16 path.
    for dtype in (jnp.float32, jnp.bfloat16):
        x = x_f32.astype(dtype)
        out = jax.block_until_ready(min_pooling(x, attention_mask))
        # reference in plain JAX (mirrors the PyTorch forward, fill in input dtype)
        emb = jnp.where(attention_mask[:, :, None] == 0, jnp.asarray(1e-4, dtype), x)
        ref = jnp.min(emb, axis=1)
        assert out.shape == (B, H) and out.dtype == dtype
        assert jnp.allclose(out.astype(jnp.float32), ref.astype(jnp.float32), atol=1e-6), \
            f"mismatch vs reference ({dtype})"

    # Second config exercising B/S padding + multi-tile H grid + S-accumulation.
    B2, S2, H2 = 3, 20, 256
    k2, k3 = jax.random.split(k_x)
    x2 = jax.random.normal(k2, (B2, S2, H2), dtype=jnp.float32)
    len2 = jnp.array([20, 13, 5], dtype=jnp.int32)
    mask2 = (jnp.arange(S2)[None, :] < len2[:, None]).astype(jnp.int32)
    out2 = jax.block_until_ready(min_pooling(x2, mask2, ts=8, th=128))
    emb2 = jnp.where(mask2[:, :, None] == 0, jnp.float32(1e-4), x2)
    ref2 = jnp.min(emb2, axis=1)
    assert out2.shape == (B2, H2)
    assert jnp.allclose(out2, ref2, atol=1e-6), "mismatch vs reference (tiled case)"

    print("KERNEL_OK")
</pallas_src>

<mosaic_0001>
module attributes {stable_mosaic.version = 11 : i64} {
  func.func @_min_pool_kernel(%arg0: i32, %arg1: i32, %arg2: i32, %arg3: memref<8x8x32xf32, #tpu.memory_space<vmem>>, %arg4: memref<8x8x1xf32, #tpu.memory_space<vmem>>, %arg5: memref<8x32xf32, #tpu.memory_space<vmem>>) attributes {dimension_semantics = [#tpu.dimension_semantics<parallel>, #tpu.dimension_semantics<parallel>, #tpu.dimension_semantics<arbitrary>], iteration_bounds = array<i64: 1, 1, 1>, scalar_prefetch = 0 : i64, scratch_operands = 0 : i64, tpu.core_type = #tpu.core_type<tc>, window_params = [{transform_indices = @transform_0, window_bounds = array<i64: 8, 8, 32>}, {transform_indices = @transform_1, window_bounds = array<i64: 8, 8, 1>}, {transform_indices = @transform_2, window_bounds = array<i64: 8, 32>}]} {
    %c0 = arith.constant 0 : index
    %c0_0 = arith.constant 0 : index
    %c0_1 = arith.constant 0 : index
    %0 = vector.load %arg3[%c0, %c0_0, %c0_1] : memref<8x8x32xf32, #tpu.memory_space<vmem>>, vector<8x8x32xf32>
    %c0_2 = arith.constant 0 : index
    %c0_3 = arith.constant 0 : index
    %c0_4 = arith.constant 0 : index
    %1 = vector.load %arg4[%c0_2, %c0_3, %c0_4] : memref<8x8x1xf32, #tpu.memory_space<vmem>>, vector<8x8x1xf32>
    %cst = arith.constant 0.000000e+00 : f32
    %2 = vector.broadcast %cst : f32 to vector<8x8x1xf32>
    %3 = arith.cmpf oeq, %1, %2 : vector<8x8x1xf32>
    %cst_5 = arith.constant 9.99999974E-5 : f32
    %4 = vector.shape_cast %3 : vector<8x8x1xi1> to vector<8x8x1xi1>
    %5 = vector.broadcast %4 : vector<8x8x1xi1> to vector<8x8x32xi1>
    %6 = vector.broadcast %cst_5 : f32 to vector<8x8x32xf32>
    %7 = arith.select %5, %6, %0 : vector<8x8x32xi1>, vector<8x8x32xf32>
    %cst_6 = arith.constant dense<0x7F800000> : vector<8x32xf32>
    %8 = vector.multi_reduction <minimumf>, %7, %cst_6 [1] : vector<8x8x32xf32> to vector<8x32xf32>
    %c0_i32 = arith.constant 0 : i32
    %9 = arith.cmpi eq, %arg2, %c0_i32 : i32
    %10 = arith.extui %9 : i1 to i32
    %c0_i32_7 = arith.constant 0 : i32
    %11 = arith.cmpi ne, %10, %c0_i32_7 : i32
    scf.if %11 {
      %c0_10 = arith.constant 0 : index
      %c0_11 = arith.constant 0 : index
      %15 = vector.load %arg5[%c0_10, %c0_11] : memref<8x32xf32, #tpu.memory_space<vmem>>, vector<8x32xf32>
      tpu.vector_store %arg5[%c0_10, %c0_11], %8 {strides = array<i32>} : memref<8x32xf32, #tpu.memory_space<vmem>>, vector<8x32xf32>,
    } else {
    }
    %c0_i32_8 = arith.constant 0 : i32
    %12 = arith.cmpi sgt, %arg2, %c0_i32_8 : i32
    %13 = arith.extui %12 : i1 to i32
    %c0_i32_9 = arith.constant 0 : i32
    %14 = arith.cmpi ne, %13, %c0_i32_9 : i32
    scf.if %14 {
      %c0_10 = arith.constant 0 : index
      %c0_11 = arith.constant 0 : index
      %15 = vector.load %arg5[%c0_10, %c0_11] : memref<8x32xf32, #tpu.memory_space<vmem>>, vector<8x32xf32>
      %16 = arith.minimumf %15, %8 : vector<8x32xf32>
      %c0_12 = arith.constant 0 : index
      %c0_13 = arith.constant 0 : index
      %17 = vector.load %arg5[%c0_12, %c0_13] : memref<8x32xf32, #tpu.memory_space<vmem>>, vector<8x32xf32>
      tpu.vector_store %arg5[%c0_12, %c0_13], %16 {strides = array<i32>} : memref<8x32xf32, #tpu.memory_space<vmem>>, vector<8x32xf32>,
    } else {
    }
    return
  }
  func.func @transform_0(%arg0: i32, %arg1: i32, %arg2: i32) -> (i32, i32, i32) {
    %c0_i32 = arith.constant 0 : i32
    return %arg0, %arg2, %arg1 : i32, i32, i32
  }
  func.func @transform_1(%arg0: i32, %arg1: i32, %arg2: i32) -> (i32, i32, i32) {
    %c0_i32 = arith.constant 0 : i32
    %c0_i32_0 = arith.constant 0 : i32
    return %arg0, %arg2, %c0_i32 : i32, i32, i32
  }
  func.func @transform_2(%arg0: i32, %arg1: i32, %arg2: i32) -> (i32, i32) {
    %c0_i32 = arith.constant 0 : i32
    return %arg0, %arg1 : i32, i32
  }
}

</mosaic_0001>

<bundles_post_ra>
// kernel: tpu_custom_call.1
= control target key start
LH: loop header
LB: loop body
LE: loop exit
PB: predicated region body
PF: predicated region fallthrough
CT: control target
= control target key end

     0   :  { %v239_v3 = vmov 0   ;;  %s317_s0 = inlined_call_operand.vmem [shape: f32[8,8,32], index: 0, kind: input, shape index: {}]   ;;  %s318_s1 = inlined_call_operand.vmem [shape: f32[8,8,1], index: 1, kind: input, shape index: {}]   ;;  %s319_s2 = inlined_call_operand.hbm [shape: f32[8,32], index: 2, kind: output, shape index: {}]  }
   0x1   :  { %v22_v0 = vld [vmem:[%s318_s1 + $0x10] sm:$0xff]  ;;  %v20_v1 = vld [vmem:[%s318_s1] sm:$0xff]  ;;  %v23_v2 = vld [vmem:[%s318_s1 + $0x18] sm:$0xff]  ;;  %216 = vset.pattern.permute.xlu1 %v239_v3  ;;  %215 = vset.pattern.permute.xlu0 %v239_v3 }
   0x2   :  { %vm30_vm0 = vcmp.eq.f32.partialorder %v22_v0, 0.0  ;;  %vm28_vm1 = vcmp.eq.f32.partialorder %v20_v1, 0.0  ;;  %vm31_vm2 = vcmp.eq.f32.partialorder %v23_v2, 0.0  ;;  %v21_v4 = vld [vmem:[%s318_s1 + $0x8] sm:$0xff]  ;;  %v24_v8 = vld [vmem:[%s318_s1 + $0x20] sm:$0xff] }
   0x3   :  { %v38_v5 = vsel %vm30_vm0, 1, %v239_v3  ;;  %v36_v6 = vsel %vm28_vm1, 1, %v239_v3  ;;  %vm29_vm3 = vcmp.eq.f32.partialorder %v21_v4, 0.0  ;;  %v25_v7 = vld [vmem:[%s318_s1 + $0x28] sm:$0xff]  ;;  %v39_v9 = vsel %vm31_vm2, 1, %v239_v3 }
   0x4   :  { %51 = vperm.xlu1 %216, %v38_v5   ;;  %45 = vperm.xlu0 %215, %v36_v6   ;;  %v37_v10 = vsel %vm29_vm3, 1, %v239_v3  ;;  %vm33_vm4 = vcmp.eq.f32.partialorder %v25_v7, 0.0  ;;  %vm32_vm5 = vcmp.eq.f32.partialorder %v24_v8, 0.0 }
   0x5   :  { %7 = vsyncpa [#allocation3], 0  ;;  %v27_v11 = vld [vmem:[%s318_s1 + $0x38] sm:$0xff]  ;;  %v26_v12 = vld [vmem:[%s318_s1 + $0x30] sm:$0xff]  ;;  %v41_v13 = vsel %vm33_vm4, 1, %v239_v3  ;;  %v40_v14 = vsel %vm32_vm5, 1, %v239_v3 }
   0x6   :  { %vm35_vm6 = vcmp.eq.f32.partialorder %v27_v11, 0.0  ;;  %vm34_vm7 = vcmp.eq.f32.partialorder %v26_v12, 0.0  ;;  %v14_v17 = vld [vmem:[%s317_s0 + $0x10] sm:$0xff]  ;;  %v12_v18 = vld [vmem:[%s317_s0] sm:$0xff]  ;;  %vm84_vm8 = vcmask 261120   ;;  %v15_v25 = vld [vmem:[%s317_s0 + $0x18] sm:$0xff] }
   0x7   :  { %v43_v15 = vsel %vm35_vm6, 1, %v239_v3  ;;  %v42_v16 = vsel %vm34_vm7, 1, %v239_v3  ;;  %v13_v26 = vld [vmem:[%s317_s0 + $0x8] sm:$0xff]  ;;  %v16_v44 = vld [vmem:[%s317_s0 + $0x20] sm:$0xff]  ;;  %v19_v54 = vld [vmem:[%s317_s0 + $0x38] sm:$0xff]  ;;  %vm153_vm1 = vcmask 1041409  }
   0x8   :  { %54 = vperm.xlu1 %216, %v39_v9   ;;  %48 = vperm.xlu0 %215, %v37_v10   ;;  %v17_v42 = vld [vmem:[%s317_s0 + $0x28] sm:$0xff]  ;;  %v18_v56 = vld [vmem:[%s317_s0 + $0x30] sm:$0xff]  ;;  %vm155_vm2 = vcmask 1042434   ;;  %vm157_vm3 = vcmask 1043459   ;;  %vm159_vm4 = vcmask 1044484   ;;  %vm161_vm5 = vcmask 1045509  }
   0x9   :  { %vm163_vm6 = vcmask 1046534   ;;  %s240_s0 = smov [#allocation2]   ;;  %vm165_vm7 = vcmask 1047559  }
   0xa   :  { %s205_s12 = sshll.u32 %s240_s0, 4  ;;  %s206_s12 = int_to_ptr.vmem [resolvable:$true] %s205_s12 }
   0xb   :  { %s217_s13 = scalar_lea.vmem %s206_s12, 128  ;;  %p222_p1 = scmp.lt.s32.totalorder %s206_s12, %s206_s12 }
   0xc   :  { %60 = vperm.xlu1 %216, %v41_v13   ;;  %57 = vperm.xlu0 %215, %v40_v14   ;;  %p218_p0 = scmp.ne.s32.totalorder %s206_s12, %s217_s13  ;;  %p223_p2 = scmp.lt.s32.totalorder %s217_s13, %s217_s13 }
   0xe   :  { %p224_p3 = por %p223_p2, %p222_p1 }
  0x10   :  { %66 = vperm.xlu1 %216, %v43_v15   ;;  %63 = vperm.xlu0 %215, %v42_v16   ;;  %p225_p4 = pnand %p224_p3, %p218_p0 }
  0x7f   :  { %v52_v19 = vpop.permute.xlu1 %51  ;;  %v46_v20 = vpop.permute.xlu0 %45 }
  0x80   :  { %vm70_vm9 = vcmp.eq.s32.totalorder %v52_v19, 1  ;;  %vm68_vm10 = vcmp.eq.s32.totalorder %v46_v20, 1 }
  0x81   :  { %v78_v21 = vsel %vm70_vm9, 0.0001, %v14_v17  ;;  %v76_v22 = vsel %vm68_vm10, 0.0001, %v12_v18 }
  0x82   :  { %v99_v23 = vsel %vm84_vm8, %v78_v21, inf  ;;  %v85_v24 = vsel %vm84_vm8, %v76_v22, inf }
  0x83   :  { %v100_v27 = vrot.slane %v99_v23, 4  ;;  %v86_v28 = vrot.slane %v85_v24, 4  ;;  %v55_v29 = vpop.permute.xlu1 %54  ;;  %v49_v30 = vpop.permute.xlu0 %48 }
  0x84   :  { %vm71_vm11 = vcmp.eq.s32.totalorder %v55_v29, 1  ;;  %vm69_vm12 = vcmp.eq.s32.totalorder %v49_v30, 1 }
  0x85   :  { %v101_v31 = vmin.f32 %v99_v23, %v100_v27  ;;  %v87_v32 = vmin.f32 %v85_v24, %v86_v28  ;;  %v79_v33 = vsel %vm71_vm11, 0.0001, %v15_v25  ;;  %v77_v34 = vsel %vm69_vm12, 0.0001, %v13_v26 }
  0x86   :  { %v106_v35 = vsel %vm84_vm8, %v79_v33, inf  ;;  %v92_v36 = vsel %vm84_vm8, %v77_v34, inf }
  0x87   :  { %v102_v37 = vrot.slane %v101_v31, 2  ;;  %v88_v38 = vrot.slane %v87_v32, 2  ;;  %v107_v39 = vrot.slane %v106_v35, 4  ;;  %v93_v40 = vrot.slane %v92_v36, 4  ;;  %v61_v41 = vpop.permute.xlu1 %60  ;;  %v58_v43 = vpop.permute.xlu0 %57 }
  0x88   :  { %vm73_vm13 = vcmp.eq.s32.totalorder %v61_v41, 1  ;;  %vm72_vm14 = vcmp.eq.s32.totalorder %v58_v43, 1 }
  0x89   :  { %v89_v45 = vmin.f32 %v87_v32, %v88_v38  ;;  %v108_v46 = vmin.f32 %v106_v35, %v107_v39  ;;  %v94_v47 = vmin.f32 %v92_v36, %v93_v40  ;;  %v81_v48 = vsel %vm73_vm13, 0.0001, %v17_v42 }
  0x8a   :  { %v80_v49 = vsel %vm72_vm14, 0.0001, %v16_v44  ;;  %v103_v50 = vmin.f32 %v101_v31, %v102_v37  ;;  %v120_v57 = vsel %vm84_vm8, %v81_v48, inf }
  0x8b   :  { %v109_v51 = vrot.slane %v108_v46, 2  ;;  %v95_v52 = vrot.slane %v94_v47, 2  ;;  %v67_v53 = vpop.permute.xlu1 %66  ;;  %v64_v55 = vpop.permute.xlu0 %63  ;;  %v113_v58 = vsel %vm84_vm8, %v80_v49, inf  ;;  %v90_v59 = vrot.slane %v89_v45, 1 }
  0x8c   :  { %vm75_vm15 = vcmp.eq.s32.totalorder %v67_v53, 1  ;;  %vm74_vm0 = vcmp.eq.s32.totalorder %v64_v55, 1  ;;  %v121_v62 = vrot.slane %v120_v57, 4  ;;  %v114_v63 = vrot.slane %v113_v58, 4 }
  0x8d   :  { %v110_v60 = vmin.f32 %v108_v46, %v109_v51  ;;  %v96_v61 = vmin.f32 %v94_v47, %v95_v52  ;;  %v83_v0 = vsel %vm75_vm15, 0.0001, %v19_v54  ;;  %v82_v1 = vsel %vm74_vm0, 0.0001, %v18_v56 }
  0x8e   :  { %v104_v2 = vrot.slane %v103_v50, 1  ;;  %v134_v4 = vsel %vm84_vm8, %v83_v0, inf  ;;  %v127_v5 = vsel %vm84_vm8, %v82_v1, inf  ;;  %v122_v6 = vmin.f32 %v120_v57, %v121_v62 }
  0x8f   :  { %v97_v3 = vrot.slane %v96_v61, 1  ;;  %v115_v7 = vmin.f32 %v113_v58, %v114_v63  ;;  %v135_v8 = vrot.slane %v134_v4, 4  ;;  %v128_v9 = vrot.slane %v127_v5, 4 }
  0x90   :  { %v91_v10 = vmin.f32 %v89_v45, %v90_v59  ;;  %v111_v11 = vrot.slane %v110_v60, 1  ;;  %v123_v13 = vrot.slane %v122_v6, 2  ;;  %v105_v17 = vmin.f32 %v103_v50, %v104_v2 }
  0x91   :  { %v98_v12 = vmin.f32 %v96_v61, %v97_v3  ;;  %v116_v14 = vrot.slane %v115_v7, 2  ;;  %v136_v15 = vmin.f32 %v134_v4, %v135_v8  ;;  %v129_v16 = vmin.f32 %v127_v5, %v128_v9 }
  0x92   :  { %v124_v19 = vmin.f32 %v122_v6, %v123_v13  ;;  %v112_v23 = vmin.f32 %v110_v60, %v111_v11 }
  0x93   :  { %v154_v18 = vsel %vm153_vm1, %v98_v12, %v91_v10  ;;  %v117_v20 = vmin.f32 %v115_v7, %v116_v14  ;;  %v137_v21 = vrot.slane %v136_v15, 2  ;;  %v130_v22 = vrot.slane %v129_v16, 2 }
  0x94   :  { %v156_v24 = vsel %vm155_vm2, %v105_v17, %v154_v18  ;;  %v125_v25 = vrot.slane %v124_v19, 1 }
  0x95   :  { %v118_v26 = vrot.slane %v117_v20, 1  ;;  %v138_v27 = vmin.f32 %v136_v15, %v137_v21  ;;  %v131_v28 = vmin.f32 %v129_v16, %v130_v22  ;;  %v158_v29 = vsel %vm157_vm3, %v112_v23, %v156_v24 }
  0x96   :  { %v126_v30 = vmin.f32 %v124_v19, %v125_v25 }
  0x97   :  { %v119_v31 = vmin.f32 %v117_v20, %v118_v26  ;;  %v139_v32 = vrot.slane %v138_v27, 1  ;;  %v132_v33 = vrot.slane %v131_v28, 1 }
  0x99   :  { %v140_v34 = vmin.f32 %v138_v27, %v139_v32  ;;  %v133_v35 = vmin.f32 %v131_v28, %v132_v33  ;;  %v160_v36 = vsel %vm159_vm4, %v119_v31, %v158_v29 }
  0x9a   :  { %v162_v37 = vsel %vm161_vm5, %v126_v30, %v160_v36 }
  0x9b   :  { %v164_v38 = vsel %vm163_vm6, %v133_v35, %v162_v37 }
  0x9c   :  { %v166_v39 = vsel %vm165_vm7, %v140_v34, %v164_v38 }
  0x9d   :  { %168 = vst.msk [vmem:[#allocation2] sm:$0xff] %vm84_vm8, %v166_v39 }
  0x9e   :  { %228 = shalt.err (!%p225_p4)
}
  0x9f   :  { %208 = dma.vmem_to_hbm [thread:$0]  %s206_s12, 128, %s319_s2, [#allocation3]  }
  0xa0   :  { %237 = dma.done.wait [#allocation3], 128  }
  0xa1   :  { %238 = vsyncadd [#allocation3], 4294967168 }
  0xa2   :  { %212 = vsyncpa [#allocation3], 1 }

</bundles_post_ra>
